<compile_context>
chip_gen: v6e
topology: v6e:2x2x1
jax: 0.10.0
libtpu: 0.0.40
codegen_flags: <defaults>
</compile_context>

<pallas_src>
import jax
import jax.numpy as jnp
from jax.experimental import pallas as pl
from jax.experimental.pallas import tpu as pltpu

_LANE = 128
_SMALL_BYPASS_BYTES = 1 << 20          # < 1 MiB output: let XLA fuse the convert
_SPLIT_BYTES = 512 * 1024              # above this, force >= 2 grid steps
_VMEM_LIMIT_BYTES = 32 * 1024 * 1024   # safe on v5e/v6e/v7x


def _fx_copy_kernel(preds_ref, fx_ref):
    # FX_detach.copy_(preds): elementwise copy + cast into the f32 FX buffer.
    fx_ref[...] = preds_ref[...].astype(fx_ref.dtype)


def _tile_budget_bytes() -> int:
    """Per-tile f32-output budget, gated per chip generation."""
    try:
        vmem = pltpu.get_tpu_info().vmem_capacity_bytes
    except Exception:
        return 2 * 1024 * 1024
    # v7x (64 MiB VMEM, 3.2 TB/s HBM): bigger tiles amortize per-step overhead.
    # Footprint: 4 MiB f32 out + <=4 MiB in, x2 double-buffered ~= 16 MiB < 32 MiB.
    if vmem <= 64 * 1024 * 1024:
        return 4 * 1024 * 1024
    # v5e/v6e: 2 MiB tiles already sit at >=85% of HBM roofline.
    return 2 * 1024 * 1024


def _align_up(n: int, m: int) -> int:
    return -(-n // m) * m


def _row_tile(total_rows: int, row_out_bytes: int, sublane: int, tile_bytes: int) -> int:
    """Largest sublane-aligned row tile whose f32 output fits the tile budget."""
    cap = max((tile_bytes // max(row_out_bytes, 1)) // sublane * sublane, sublane)
    if total_rows > cap:
        return cap
    # Mid-size arrays: keep >= 2 grid steps so the "parallel" axis can be
    # sharded across both v7x TensorCores and double-buffering has overlap.
    if total_rows * row_out_bytes > _SPLIT_BYTES and total_rows >= 2 * sublane:
        return min(total_rows, _align_up(pl.cdiv(total_rows, 2), sublane))
    return total_rows


def _copy_call(x2d: jax.Array, rows: int, cols: int, tb: int, in_itemsize: int) -> jax.Array:
    bytes_accessed = rows * cols * (in_itemsize + 4)  # read input + write f32 output
    return pl.pallas_call(
        _fx_copy_kernel,
        out_shape=jax.ShapeDtypeStruct((rows, cols), jnp.float32),
        grid=(pl.cdiv(rows, tb),),
        in_specs=[pl.BlockSpec((tb, cols), lambda i: (i, 0))],
        out_specs=pl.BlockSpec((tb, cols), lambda i: (i, 0)),
        compiler_params=pltpu.CompilerParams(
            dimension_semantics=("parallel",),
            vmem_limit_bytes=_VMEM_LIMIT_BYTES,
        ),
        cost_estimate=pl.CostEstimate(
            flops=0, transcendentals=0, bytes_accessed=bytes_accessed
        ),
    )(x2d)


def fx_update(preds: jax.Array, *, force_kernel: bool = False) -> jax.Array:
    """Copy/cast booster predictions into a float32 FX buffer.

    preds: [batch, output_dim] (any float/int dtype)
    returns: float32 [batch, output_dim]
    """
    batch, out_dim = preds.shape

    # LightGBM predictions are f64 on host; TPU has no native f64 -> downcast.
    if preds.dtype == jnp.float64:
        preds = preds.astype(jnp.float32)

    out_bytes = batch * out_dim * 4
    if not force_kernel:
        if preds.dtype == jnp.float32:
            # f32 -> f32 "copy" into an immutable JAX array is a no-op.
            return preds
        if out_bytes < _SMALL_BYPASS_BYTES:
            # Tiny arrays (the real LGBModule case): a fused XLA convert is far
            # cheaper than pallas_call launch + pipeline-prologue overhead.
            return preds.astype(jnp.float32)

    itemsize = jnp.dtype(preds.dtype).itemsize
    # Min tile sublane granularity: 8 (32-bit), 16 (16-bit), 32 (8-bit).
    sublane = 8 if itemsize >= 4 else (16 if itemsize == 2 else 32)
    tile_bytes = _tile_budget_bytes()

    if out_dim % _LANE == 0:
        # Tile-preserving lane-dense flatten: (batch, out_dim) -> (rows, 128) is
        # a pure relabel (no HBM relayout) only when out_dim % 128 == 0.
        rows = (batch * out_dim) // _LANE
        tb = _row_tile(rows, _LANE * 4, sublane, tile_bytes)
        out = _copy_call(preds.reshape(rows, _LANE), rows, _LANE, tb, itemsize)
        return out.reshape(batch, out_dim)

    # Natural shape: full out_dim on the lane axis (last block dim == full array
    # dim satisfies the (8,128) rule); avoids relayout copies for odd out_dim.
    tb = _row_tile(batch, out_dim * 4, sublane, tile_bytes)
    return _copy_call(preds, batch, out_dim, tb, itemsize)


class LGBModuleJAX:
    """JAX/Pallas mirror of gbnet.lgbmodule.LGBModule (forward pass only)."""

    def __init__(self, batch_size, input_dim, output_dim, params=None):
        self.batch_size = batch_size
        self.input_dim = input_dim
        self.output_dim = output_dim
        self.params = dict(params or {})
        self.bst = None
        # nn.Parameter(torch.zeros([batch_size, output_dim], dtype=torch.float))
        self.FX = jnp.zeros((batch_size, output_dim), dtype=jnp.float32)
        self.training = True

    def forward(self, input_array, return_tensor=True):
        assert input_array.ndim == 2, "Input must be a 2-D array"
        if self.training:
            # bst is None in a fresh module -> preds are zeros.
            preds = jnp.zeros((self.batch_size, self.output_dim), jnp.float32)
        else:
            preds = jnp.zeros((input_array.shape[0], self.output_dim), jnp.float32)

        if self.training:
            # FX_detach.copy_(preds): device-side copy/cast (Pallas kernel only
            # when a cast is needed AND the array is big enough to amortize it).
            self.FX = fx_update(preds.reshape(self.batch_size, self.output_dim))

        if return_tensor:
            if self.training:
                return self.FX
            # Eval path returns preds directly and never updates FX (matches
            # the PyTorch module; intentional).
            return preds.reshape(-1, self.output_dim).astype(jnp.float32)
        return preds


if __name__ == "__main__":
    batch_size, input_dim, output_dim = 16, 32, 8

    key = jax.random.PRNGKey(0)
    k_x, k_p, k_q = jax.random.split(key, 3)
    # Input features (fed to the booster in the real module).
    x = jax.random.normal(k_x, (batch_size, input_dim), dtype=jnp.float32)

    # --- Exercise the Pallas FX-update kernel: natural-shape path (out_dim=8). ---
    preds_bf16 = jax.random.normal(k_p, (batch_size, output_dim)).astype(jnp.bfloat16)
    fx = jax.block_until_ready(fx_update(preds_bf16, force_kernel=True))
    ref = preds_bf16.astype(jnp.float32)
    assert fx.shape == (batch_size, output_dim) and fx.dtype == jnp.float32
    assert bool(jnp.all(fx == ref)), "Pallas FX copy/cast mismatch (natural path)"

    # --- Exercise the lane-dense path (out_dim % 128 == 0). ---
    preds_wide = jax.random.normal(k_q, (batch_size, _LANE)).astype(jnp.bfloat16)
    fx_wide = jax.block_until_ready(fx_update(preds_wide, force_kernel=True))
    assert fx_wide.shape == (batch_size, _LANE) and fx_wide.dtype == jnp.float32
    assert bool(jnp.all(fx_wide == preds_wide.astype(jnp.float32))), \
        "Pallas FX copy/cast mismatch (lane-dense path)"

    # --- Module forward, training and eval (fresh module, bst=None). ---
    mod = LGBModuleJAX(batch_size, input_dim, output_dim)

    out_train = jax.block_until_ready(mod.forward(x, return_tensor=True))
    mod.training = False
    out_eval = jax.block_until_ready(mod.forward(x, return_tensor=True))

    assert out_train.shape == (batch_size, output_dim) and out_train.dtype == jnp.float32
    assert out_eval.shape == (batch_size, output_dim) and out_eval.dtype == jnp.float32
    assert bool(jnp.all(out_train == 0.0))
    assert bool(jnp.all(out_eval == 0.0))

    print("KERNEL_OK")
</pallas_src>

<mosaic_0001>
module attributes {stable_mosaic.version = 11 : i64} {
  func.func @_fx_copy_kernel(%arg0: i32, %arg1: memref<16x8xbf16, #tpu.memory_space<vmem>>, %arg2: memref<16x8xf32, #tpu.memory_space<vmem>>) attributes {dimension_semantics = [#tpu.dimension_semantics<parallel>], iteration_bounds = array<i64: 1>, scalar_prefetch = 0 : i64, scratch_operands = 0 : i64, tpu.core_type = #tpu.core_type<tc>, window_params = [{transform_indices = @transform_0, window_bounds = array<i64: 16, 8>}, {transform_indices = @transform_1, window_bounds = array<i64: 16, 8>}]} {
    %c0 = arith.constant 0 : index
    %c0_0 = arith.constant 0 : index
    %0 = vector.load %arg1[%c0, %c0_0] : memref<16x8xbf16, #tpu.memory_space<vmem>>, vector<16x8xbf16>
    %1 = arith.extf %0 : vector<16x8xbf16> to vector<16x8xf32>
    %c0_1 = arith.constant 0 : index
    %c0_2 = arith.constant 0 : index
    %2 = vector.load %arg2[%c0_1, %c0_2] : memref<16x8xf32, #tpu.memory_space<vmem>>, vector<16x8xf32>
    tpu.vector_store %arg2[%c0_1, %c0_2], %1 {strides = array<i32>} : memref<16x8xf32, #tpu.memory_space<vmem>>, vector<16x8xf32>,
    return
  }
  func.func @transform_0(%arg0: i32) -> (i32, i32) {
    %c0_i32 = arith.constant 0 : i32
    %c0_i32_0 = arith.constant 0 : i32
    return %arg0, %c0_i32 : i32, i32
  }
  func.func @transform_1(%arg0: i32) -> (i32, i32) {
    %c0_i32 = arith.constant 0 : i32
    %c0_i32_0 = arith.constant 0 : i32
    return %arg0, %c0_i32 : i32, i32
  }
}

</mosaic_0001>

<bundles_post_ra>
// kernel: tpu_custom_call.1
= control target key start
LH: loop header
LB: loop body
LE: loop exit
PB: predicated region body
PF: predicated region fallthrough
CT: control target
= control target key end

     0   :  { %vm12_vm0 = vcmask 64512   ;;  %s42_s0 = inlined_call_operand.vmem [shape: bf16[16,8], index: 0, kind: input, shape index: {}]   ;;  %s43_s1 = inlined_call_operand.vmem [shape: f32[16,8], index: 1, kind: output, shape index: {}]  }
   0x1   :  { %v20_v0 = vld [vmem:[%s42_s0] sm:$0xff]  }
   0x2   :  { %v21_v1 = vunpack.c.l.bf16 %v20_v0  ;;  %v22_v2 = vunpack.c.h.bf16 %v20_v0 }
   0x4   :  { %13 = vst.msk [vmem:[%s43_s1] sm:$0xff] %vm12_vm0, %v21_v1  ;;  %14 = vst.msk [vmem:[%s43_s1 + $0x8] sm:$0xff] %vm12_vm0, %v22_v2 }

</bundles_post_ra>
